<compile_context>
chip_gen: v5e
topology: v5e:2x2
jax: 0.10.0
libtpu: 0.0.40
codegen_flags: <defaults>
</compile_context>

<pallas_src>
import math

import jax
import jax.numpy as jnp
from jax.experimental import pallas as pl
from jax.experimental.pallas import tpu as pltpu

SQRT_HALF = math.sqrt(0.5)
LANE = 128


def _round_up(n, m):
    return ((n + m - 1) // m) * m


def _pad_axis(a, axis, target):
    pad = target - a.shape[axis]
    if pad <= 0:
        return a
    widths = [(0, 0)] * a.ndim
    widths[axis] = (0, pad)
    return jnp.pad(a, widths)


def _make_kernel(B, T, S_orig, compute_dtype):
    """Kernel closure over static shape info."""
    out_scale = float(S_orig * math.sqrt(1.0 / S_orig)) * SQRT_HALF
    approx_recip = jnp.dtype(compute_dtype) != jnp.dtype(jnp.float32)

    def kernel(x_ref, we_ref, y_ref, yt_ref, wi_ref, bi_ref, wo_ref, bo_ref,
               out_ref, attn_ref, z_ref, ctx_ref):
        s = pl.program_id(0)
        BT = x_ref.shape[0]
        Ep = z_ref.shape[1]
        TS = y_ref.shape[2]

        # ---- once, at the first S tile: in-projection + wordemb mix, ctx init.
        @pl.when(s == 0)
        def _init():
            xc = x_ref[...].astype(compute_dtype)
            z = (jnp.dot(xc, wi_ref[...], preferred_element_type=jnp.float32)
                 + bi_ref[...] + we_ref[...].astype(jnp.float32)) * SQRT_HALF
            z_ref[...] = z.astype(z_ref.dtype)
            ctx_ref[...] = jnp.zeros_like(ctx_ref)

        # ---- per S tile: scores bmm -> softmax(dim=0 of (B*T, S)) -> attn.
        z3 = z_ref[...].reshape(B, T, Ep)
        scores = jnp.einsum('bte,bes->bts', z3, y_ref[...],
                            preferred_element_type=jnp.float32)
        s2 = scores.reshape(BT, TS)
        m = jnp.max(s2, axis=0, keepdims=True)                 # (1, TS)
        e = jnp.exp(s2 - m)
        denom = jnp.sum(e, axis=0, keepdims=True)              # (1, TS)
        attn2 = e * pl.reciprocal(denom, approx=approx_recip)  # (BT, TS)
        attn_ref[...] = attn2

        # ---- per S tile: context bmm with pre-transposed y (canonical matmul).
        ctx_t = jnp.einsum('bts,bse->bte',
                           attn2.reshape(B, T, TS).astype(compute_dtype),
                           yt_ref[...],
                           preferred_element_type=jnp.float32)
        ctx_ref[...] += ctx_t.reshape(BT, Ep)

        # ---- once, at the last S tile: out-projection + residual epilogue.
        @pl.when(s == pl.num_programs(0) - 1)
        def _fin():
            ctx_c = ctx_ref[...].astype(compute_dtype)
            out = jnp.dot(ctx_c, wo_ref[...], preferred_element_type=jnp.float32)
            out_ref[...] = out * out_scale + x_ref[...] * SQRT_HALF + bo_ref[...]

    return kernel


def prepare_params(w_in, b_in, w_out, b_out, compute_dtype=jnp.float32):
    """One-time (outside the per-call jit) transpose + pad + scale of params.

    w_in: (E, C), w_out: (C, E) in PyTorch (out, in) layout.
    Returns lane-padded W_in^T (Cp,Ep), b_in (1,Ep), W_out^T (Ep,Cp),
    b_out*sqrt(0.5) (1,Cp).  Weights are stored in `compute_dtype`
    (bf16 for MXU-heavy v6e/v7x runs), biases stay f32.
    """
    E, C = w_in.shape
    Cp, Ep = _round_up(C, LANE), _round_up(E, LANE)
    wi_t = _pad_axis(_pad_axis(w_in.T, 0, Cp), 1, Ep).astype(compute_dtype)
    bi = _pad_axis(b_in.reshape(1, E), 1, Ep).astype(jnp.float32)
    wo_t = _pad_axis(_pad_axis(w_out.T, 0, Ep), 1, Cp).astype(compute_dtype)
    bo_s = _pad_axis((b_out * SQRT_HALF).reshape(1, C), 1, Cp).astype(jnp.float32)
    return wi_t, bi, wo_t, bo_s


@jax.jit
def attention_layer(x, wordemb, imgsfeats, wi_t, bi, wo_t, bo_s):
    B, T, C = x.shape
    _, E, fh, fw = imgsfeats.shape
    S = fh * fw
    BT = B * T
    Cp, Ep = wi_t.shape
    Sp = _round_up(S, LANE)
    TS = LANE
    n_s = Sp // TS
    compute_dtype = wi_t.dtype

    # Per-call glue (fused by jit): flatten, zero-pad to lane-dense shapes,
    # cast MXU-only operands to the compute dtype.  x stays f32 (residual).
    x2 = _pad_axis(x.reshape(BT, C), 1, Cp)
    we2 = _pad_axis(wordemb.reshape(BT, E), 1, Ep).astype(compute_dtype)
    y = imgsfeats.reshape(B, E, S)
    y_p = _pad_axis(_pad_axis(y, 1, Ep), 2, Sp).astype(compute_dtype)  # (B,Ep,Sp)
    yt_p = jnp.transpose(y_p, (0, 2, 1))                               # (B,Sp,Ep)

    kernel = _make_kernel(B, T, S, compute_dtype)

    in_specs = [
        pl.BlockSpec((BT, Cp), lambda s: (0, 0)),        # x (resident)
        pl.BlockSpec((BT, Ep), lambda s: (0, 0)),        # wordemb (resident)
        pl.BlockSpec((B, Ep, TS), lambda s: (0, 0, s)),  # y tile
        pl.BlockSpec((B, TS, Ep), lambda s: (0, s, 0)),  # y^T tile
        pl.BlockSpec((Cp, Ep), lambda s: (0, 0)),        # W_in^T (resident)
        pl.BlockSpec((1, Ep), lambda s: (0, 0)),         # b_in
        pl.BlockSpec((Ep, Cp), lambda s: (0, 0)),        # W_out^T (resident)
        pl.BlockSpec((1, Cp), lambda s: (0, 0)),         # b_out * sqrt(0.5)
    ]
    out_specs = (
        pl.BlockSpec((BT, Cp), lambda s: (0, 0)),        # out (written at last s)
        pl.BlockSpec((BT, TS), lambda s: (0, s)),        # attn tile (lane-dense)
    )
    scratch_shapes = [
        pltpu.VMEM((BT, Ep), compute_dtype),             # z (persists over S tiles)
        pltpu.VMEM((BT, Ep), jnp.float32),               # ctx accumulator
    ]

    itemsize = jnp.dtype(compute_dtype).itemsize
    flops = 4 * BT * Cp * Ep + 4 * BT * Ep * Sp
    transcendentals = BT * Sp
    bytes_accessed = (BT * Cp * 4 + BT * Ep * itemsize + 2 * B * Ep * Sp * itemsize
                      + Cp * Ep * itemsize + Ep * 4 + Ep * Cp * itemsize + Cp * 4
                      + BT * Cp * 4 + BT * Sp * 4)

    out_p, attn_p = pl.pallas_call(
        kernel,
        out_shape=(jax.ShapeDtypeStruct((BT, Cp), jnp.float32),
                   jax.ShapeDtypeStruct((BT, Sp), jnp.float32)),
        grid_spec=pltpu.PrefetchScalarGridSpec(
            num_scalar_prefetch=0,
            grid=(n_s,),
            in_specs=in_specs,
            out_specs=out_specs,
            scratch_shapes=scratch_shapes),
        compiler_params=pltpu.CompilerParams(
            dimension_semantics=("arbitrary",),
            vmem_limit_bytes=64 * 1024 * 1024),
        cost_estimate=pl.CostEstimate(flops=int(flops),
                                      transcendentals=int(transcendentals),
                                      bytes_accessed=int(bytes_accessed)),
    )(x2, we2, y_p, yt_p, wi_t, bi, wo_t, bo_s)

    out = out_p[:, :C].reshape(B, T, C)
    attn = attn_p[:, :S].reshape(B, T, S)
    return out, attn


def init_weight_norm_linear(key, in_features, out_features, dropout=0.0):
    """Deterministic init matching Linear() + nn.utils.weight_norm at init.

    v ~ Normal(0, sqrt((1-dropout)/in_features)), b = 0, g = ||v|| per row,
    effective weight = g * v / ||v||  (== v at initialization).
    """
    std = math.sqrt((1.0 - dropout) / in_features)
    v = std * jax.random.normal(key, (out_features, in_features), dtype=jnp.float32)
    b = jnp.zeros((out_features,), jnp.float32)
    norm = jnp.sqrt(jnp.sum(v * v, axis=1, keepdims=True))
    g = norm                              # weight_norm init: g = ||v||
    w_eff = g * v / norm
    return w_eff, b


def reference_forward(x, wordemb, imgsfeats, w_in, b_in, w_out, b_out):
    """Pure-JAX reference mirroring the PyTorch forward exactly."""
    residual = x
    z = (x @ w_in.T + b_in + wordemb) * SQRT_HALF
    B, E, fh, fw = imgsfeats.shape
    S = fh * fw
    y = imgsfeats.reshape(B, E, S)
    scores = jnp.einsum('bte,bes->bts', z, y)
    Bt, T, _ = scores.shape
    flat = scores.reshape(Bt * T, S)
    flat = jax.nn.softmax(flat, axis=0)          # softmax over B*T per spatial pos
    attn = flat.reshape(Bt, T, S)
    ctx = jnp.einsum('bts,bse->bte', attn, jnp.transpose(y, (0, 2, 1)))
    ctx = ctx * (S * math.sqrt(1.0 / S))
    out = (ctx @ w_out.T + b_out + residual) * SQRT_HALF
    return out, attn


if __name__ == "__main__":
    B, T = 2, 8              # batch, sequence length
    C = 4                    # conv_channels (x / residual feature dim)
    E = 32                   # embed_dim (== imgsfeats channel dim)
    fh, fw = 4, 4            # spatial -> S = 16

    key = jax.random.PRNGKey(0)
    kx, kw, kf, k1, k2 = jax.random.split(key, 5)

    x = jax.random.normal(kx, (B, T, C), dtype=jnp.float32)
    wordemb = jax.random.normal(kw, (B, T, E), dtype=jnp.float32)
    imgsfeats = jax.random.normal(kf, (B, E, fh, fw), dtype=jnp.float32)

    w_in, b_in = init_weight_norm_linear(k1, C, E)     # in_projection
    w_out, b_out = init_weight_norm_linear(k2, E, C)   # out_projection

    ref_out, ref_attn = reference_forward(x, wordemb, imgsfeats,
                                          w_in, b_in, w_out, b_out)

    # --- f32 MXU path: exact-tolerance check against the PyTorch-equivalent ref.
    params_f32 = prepare_params(w_in, b_in, w_out, b_out,
                                compute_dtype=jnp.float32)
    out, attn = attention_layer(x, wordemb, imgsfeats, *params_f32)
    out, attn = jax.block_until_ready((out, attn))
    assert jnp.allclose(out, ref_out, atol=1e-5, rtol=1e-5)
    assert jnp.allclose(attn, ref_attn, atol=1e-5, rtol=1e-5)

    # --- bf16 MXU-operand path (v6e/v7x win): f32 accumulation + f32 softmax,
    #     verified with a loose tolerance appropriate for bf16 operands.
    params_bf16 = prepare_params(w_in, b_in, w_out, b_out,
                                 compute_dtype=jnp.bfloat16)
    out_bf, attn_bf = attention_layer(x, wordemb, imgsfeats, *params_bf16)
    out_bf, attn_bf = jax.block_until_ready((out_bf, attn_bf))
    assert bool(jnp.all(jnp.isfinite(out_bf)))
    assert bool(jnp.all(jnp.isfinite(attn_bf)))
    assert jnp.allclose(out_bf, ref_out, atol=2e-1, rtol=2e-1)
    assert jnp.allclose(attn_bf, ref_attn, atol=5e-2, rtol=2e-1)

    print("KERNEL_OK")
</pallas_src>

<mosaic_0001>
module attributes {stable_mosaic.version = 11 : i64} {
  func.func @kernel(%arg0: i32, %arg1: memref<16x128xf32, #tpu.memory_space<vmem>>, %arg2: memref<16x128xf32, #tpu.memory_space<vmem>>, %arg3: memref<2x128x128xf32, #tpu.memory_space<vmem>>, %arg4: memref<2x128x128xf32, #tpu.memory_space<vmem>>, %arg5: memref<128x128xf32, #tpu.memory_space<vmem>>, %arg6: memref<1x128xf32, #tpu.memory_space<vmem>>, %arg7: memref<128x128xf32, #tpu.memory_space<vmem>>, %arg8: memref<1x128xf32, #tpu.memory_space<vmem>>, %arg9: memref<16x128xf32, #tpu.memory_space<vmem>>, %arg10: memref<16x128xf32, #tpu.memory_space<vmem>>, %arg11: memref<16x128xf32, #tpu.memory_space<vmem>>, %arg12: memref<16x128xf32, #tpu.memory_space<vmem>>) attributes {dimension_semantics = [#tpu.dimension_semantics<arbitrary>], iteration_bounds = array<i64: 1>, scalar_prefetch = 0 : i64, scratch_operands = 2 : i64, tpu.core_type = #tpu.core_type<tc>, window_params = [{pipeline_mode = #tpu.pipeline_mode<synchronous>, transform_indices = @transform_0, window_bounds = array<i64: 16, 128>}, {pipeline_mode = #tpu.pipeline_mode<synchronous>, transform_indices = @transform_1, window_bounds = array<i64: 16, 128>}, {transform_indices = @transform_2, window_bounds = array<i64: 2, 128, 128>}, {transform_indices = @transform_3, window_bounds = array<i64: 2, 128, 128>}, {pipeline_mode = #tpu.pipeline_mode<synchronous>, transform_indices = @transform_4, window_bounds = array<i64: 128, 128>}, {pipeline_mode = #tpu.pipeline_mode<synchronous>, transform_indices = @transform_5, window_bounds = array<i64: 1, 128>}, {pipeline_mode = #tpu.pipeline_mode<synchronous>, transform_indices = @transform_6, window_bounds = array<i64: 128, 128>}, {pipeline_mode = #tpu.pipeline_mode<synchronous>, transform_indices = @transform_7, window_bounds = array<i64: 1, 128>}, {pipeline_mode = #tpu.pipeline_mode<synchronous>, transform_indices = @transform_8, window_bounds = array<i64: 16, 128>}, {transform_indices = @transform_9, window_bounds = array<i64: 16, 128>}]} {
    %c0_i32 = arith.constant 0 : i32
    %0 = arith.cmpi eq, %arg0, %c0_i32 : i32
    %1 = arith.extui %0 : i1 to i32
    %c0_i32_0 = arith.constant 0 : i32
    %2 = arith.cmpi ne, %1, %c0_i32_0 : i32
    scf.if %2 {
      %c0_19 = arith.constant 0 : index
      %c0_20 = arith.constant 0 : index
      %29 = vector.load %arg1[%c0_19, %c0_20] : memref<16x128xf32, #tpu.memory_space<vmem>>, vector<16x128xf32>
      %c0_21 = arith.constant 0 : index
      %c0_22 = arith.constant 0 : index
      %30 = vector.load %arg5[%c0_21, %c0_22] : memref<128x128xf32, #tpu.memory_space<vmem>>, vector<128x128xf32>
      %cst_23 = arith.constant dense<0.000000e+00> : vector<16x128xf32>
      %31 = tpu.matmul %29, %30, %cst_23 {dimension_numbers = #tpu.dot_dimension_numbers<[1], [0], [0], [1], [0, 0, 1, 1], [], []>} : vector<16x128xf32>, vector<128x128xf32>, vector<16x128xf32> -> vector<16x128xf32>
      %c0_24 = arith.constant 0 : index
      %c0_25 = arith.constant 0 : index
      %32 = vector.load %arg6[%c0_24, %c0_25] : memref<1x128xf32, #tpu.memory_space<vmem>>, vector<1x128xf32>
      %33 = vector.broadcast %32 : vector<1x128xf32> to vector<16x128xf32>
      %34 = arith.addf %31, %33 : vector<16x128xf32>
      %c0_26 = arith.constant 0 : index
      %c0_27 = arith.constant 0 : index
      %35 = vector.load %arg2[%c0_26, %c0_27] : memref<16x128xf32, #tpu.memory_space<vmem>>, vector<16x128xf32>
      %36 = arith.addf %34, %35 : vector<16x128xf32>
      %cst_28 = arith.constant 0.707106769 : f32
      %37 = vector.broadcast %cst_28 : f32 to vector<16x128xf32>
      %38 = arith.mulf %36, %37 : vector<16x128xf32>
      %c0_29 = arith.constant 0 : index
      %c0_30 = arith.constant 0 : index
      %39 = vector.load %arg11[%c0_29, %c0_30] : memref<16x128xf32, #tpu.memory_space<vmem>>, vector<16x128xf32>
      tpu.vector_store %arg11[%c0_29, %c0_30], %38 {strides = array<i32>} : memref<16x128xf32, #tpu.memory_space<vmem>>, vector<16x128xf32>,
      %cst_31 = arith.constant 0.000000e+00 : f32
      %40 = vector.broadcast %cst_31 : f32 to vector<16x128xf32>
      %c0_32 = arith.constant 0 : index
      %c0_33 = arith.constant 0 : index
      %41 = vector.load %arg12[%c0_32, %c0_33] : memref<16x128xf32, #tpu.memory_space<vmem>>, vector<16x128xf32>
      tpu.vector_store %arg12[%c0_32, %c0_33], %40 {strides = array<i32>} : memref<16x128xf32, #tpu.memory_space<vmem>>, vector<16x128xf32>,
    } else {
    }
    %c0 = arith.constant 0 : index
    %c0_1 = arith.constant 0 : index
    %3 = vector.load %arg11[%c0, %c0_1] : memref<16x128xf32, #tpu.memory_space<vmem>>, vector<16x128xf32>
    %4 = vector.shape_cast %3 : vector<16x128xf32> to vector<2x8x128xf32>
    %c0_2 = arith.constant 0 : index
    %c0_3 = arith.constant 0 : index
    %c0_4 = arith.constant 0 : index
    %5 = vector.load %arg3[%c0_2, %c0_3, %c0_4] : memref<2x128x128xf32, #tpu.memory_space<vmem>>, vector<2x128x128xf32>
    "tpu.trace_start"() <{level = 10 : i32, message = "bte,bes->bts"}> : () -> ()
    %cst = arith.constant dense<0.000000e+00> : vector<2x8x128xf32>
    %6 = tpu.matmul %4, %5, %cst {dimension_numbers = #tpu.dot_dimension_numbers<[2], [1], [1], [2], [0, 0, 0, 1, 1, 2], [0], [0]>} : vector<2x8x128xf32>, vector<2x128x128xf32>, vector<2x8x128xf32> -> vector<2x8x128xf32>
    "tpu.trace_stop"() : () -> ()
    %7 = vector.shape_cast %6 : vector<2x8x128xf32> to vector<16x128xf32>
    %cst_5 = arith.constant dense<0xFF800000> : vector<128xf32>
    %8 = vector.multi_reduction <maximumf>, %7, %cst_5 [0] : vector<16x128xf32> to vector<128xf32>
    %9 = vector.shape_cast %8 : vector<128xf32> to vector<1x128xf32>
    %10 = vector.broadcast %9 : vector<1x128xf32> to vector<16x128xf32>
    %11 = arith.subf %7, %10 : vector<16x128xf32>
    %12 = math.exp %11 : vector<16x128xf32>
    %cst_6 = arith.constant dense<0.000000e+00> : vector<128xf32>
    %13 = vector.multi_reduction <add>, %12, %cst_6 [0] : vector<16x128xf32> to vector<128xf32>
    %14 = vector.shape_cast %13 : vector<128xf32> to vector<1x128xf32>
    %15 = tpu.reciprocal %14 : vector<1x128xf32> -> vector<1x128xf32>
    %16 = vector.broadcast %15 : vector<1x128xf32> to vector<16x128xf32>
    %17 = arith.mulf %12, %16 : vector<16x128xf32>
    %c0_7 = arith.constant 0 : index
    %c0_8 = arith.constant 0 : index
    %18 = vector.load %arg10[%c0_7, %c0_8] : memref<16x128xf32, #tpu.memory_space<vmem>>, vector<16x128xf32>
    tpu.vector_store %arg10[%c0_7, %c0_8], %17 {strides = array<i32>} : memref<16x128xf32, #tpu.memory_space<vmem>>, vector<16x128xf32>,
    %19 = vector.shape_cast %17 : vector<16x128xf32> to vector<2x8x128xf32>
    %c0_9 = arith.constant 0 : index
    %c0_10 = arith.constant 0 : index
    %c0_11 = arith.constant 0 : index
    %20 = vector.load %arg4[%c0_9, %c0_10, %c0_11] : memref<2x128x128xf32, #tpu.memory_space<vmem>>, vector<2x128x128xf32>
    "tpu.trace_start"() <{level = 10 : i32, message = "bts,bse->bte"}> : () -> ()
    %cst_12 = arith.constant dense<0.000000e+00> : vector<2x8x128xf32>
    %21 = tpu.matmul %19, %20, %cst_12 {dimension_numbers = #tpu.dot_dimension_numbers<[2], [1], [1], [2], [0, 0, 0, 1, 1, 2], [0], [0]>} : vector<2x8x128xf32>, vector<2x128x128xf32>, vector<2x8x128xf32> -> vector<2x8x128xf32>
    "tpu.trace_stop"() : () -> ()
    %c0_13 = arith.constant 0 : index
    %c0_14 = arith.constant 0 : index
    %22 = vector.load %arg12[%c0_13, %c0_14] : memref<16x128xf32, #tpu.memory_space<vmem>>, vector<16x128xf32>
    %23 = vector.shape_cast %21 : vector<2x8x128xf32> to vector<16x128xf32>
    %24 = arith.addf %22, %23 : vector<16x128xf32>
    %c0_15 = arith.constant 0 : index
    %c0_16 = arith.constant 0 : index
    %25 = vector.load %arg12[%c0_15, %c0_16] : memref<16x128xf32, #tpu.memory_space<vmem>>, vector<16x128xf32>
    tpu.vector_store %arg12[%c0_15, %c0_16], %24 {strides = array<i32>} : memref<16x128xf32, #tpu.memory_space<vmem>>, vector<16x128xf32>,
    %c0_i32_17 = arith.constant 0 : i32
    %26 = arith.cmpi eq, %arg0, %c0_i32_17 : i32
    %27 = arith.extui %26 : i1 to i32
    %c0_i32_18 = arith.constant 0 : i32
    %28 = arith.cmpi ne, %27, %c0_i32_18 : i32
    scf.if %28 {
      %c0_19 = arith.constant 0 : index
      %c0_20 = arith.constant 0 : index
      %29 = vector.load %arg12[%c0_19, %c0_20] : memref<16x128xf32, #tpu.memory_space<vmem>>, vector<16x128xf32>
      %c0_21 = arith.constant 0 : index
      %c0_22 = arith.constant 0 : index
      %30 = vector.load %arg7[%c0_21, %c0_22] : memref<128x128xf32, #tpu.memory_space<vmem>>, vector<128x128xf32>
      %cst_23 = arith.constant dense<0.000000e+00> : vector<16x128xf32>
      %31 = tpu.matmul %29, %30, %cst_23 {dimension_numbers = #tpu.dot_dimension_numbers<[1], [0], [0], [1], [0, 0, 1, 1], [], []>} : vector<16x128xf32>, vector<128x128xf32>, vector<16x128xf32> -> vector<16x128xf32>
      %cst_24 = arith.constant 2.82842708 : f32
      %32 = vector.broadcast %cst_24 : f32 to vector<16x128xf32>
      %33 = arith.mulf %31, %32 : vector<16x128xf32>
      %c0_25 = arith.constant 0 : index
      %c0_26 = arith.constant 0 : index
      %34 = vector.load %arg1[%c0_25, %c0_26] : memref<16x128xf32, #tpu.memory_space<vmem>>, vector<16x128xf32>
      %cst_27 = arith.constant 0.707106769 : f32
      %35 = vector.broadcast %cst_27 : f32 to vector<16x128xf32>
      %36 = arith.mulf %34, %35 : vector<16x128xf32>
      %37 = arith.addf %33, %36 : vector<16x128xf32>
      %c0_28 = arith.constant 0 : index
      %c0_29 = arith.constant 0 : index
      %38 = vector.load %arg8[%c0_28, %c0_29] : memref<1x128xf32, #tpu.memory_space<vmem>>, vector<1x128xf32>
      %39 = vector.broadcast %38 : vector<1x128xf32> to vector<16x128xf32>
      %40 = arith.addf %37, %39 : vector<16x128xf32>
      %c0_30 = arith.constant 0 : index
      %c0_31 = arith.constant 0 : index
      %41 = vector.load %arg9[%c0_30, %c0_31] : memref<16x128xf32, #tpu.memory_space<vmem>>, vector<16x128xf32>
      tpu.vector_store %arg9[%c0_30, %c0_31], %40 {strides = array<i32>} : memref<16x128xf32, #tpu.memory_space<vmem>>, vector<16x128xf32>,
    } else {
    }
    return
  }
  func.func @transform_0(%arg0: i32) -> (i32, i32) {
    %c0_i32 = arith.constant 0 : i32
    %c0_i32_0 = arith.constant 0 : i32
    %c0_i32_1 = arith.constant 0 : i32
    return %c0_i32, %c0_i32_0 : i32, i32
  }
  func.func @transform_1(%arg0: i32) -> (i32, i32) {
    %c0_i32 = arith.constant 0 : i32
    %c0_i32_0 = arith.constant 0 : i32
    %c0_i32_1 = arith.constant 0 : i32
    return %c0_i32, %c0_i32_0 : i32, i32
  }
  func.func @transform_2(%arg0: i32) -> (i32, i32, i32) {
    %c0_i32 = arith.constant 0 : i32
    %c0_i32_0 = arith.constant 0 : i32
    %c0_i32_1 = arith.constant 0 : i32
    return %c0_i32, %c0_i32_0, %arg0 : i32, i32, i32
  }
  func.func @transform_3(%arg0: i32) -> (i32, i32, i32) {
    %c0_i32 = arith.constant 0 : i32
    %c0_i32_0 = arith.constant 0 : i32
    %c0_i32_1 = arith.constant 0 : i32
    return %c0_i32, %arg0, %c0_i32_0 : i32, i32, i32
  }
  func.func @transform_4(%arg0: i32) -> (i32, i32) {
    %c0_i32 = arith.constant 0 : i32
    %c0_i32_0 = arith.constant 0 : i32
    %c0_i32_1 = arith.constant 0 : i32
    return %c0_i32, %c0_i32_0 : i32, i32
  }
  func.func @transform_5(%arg0: i32) -> (i32, i32) {
    %c0_i32 = arith.constant 0 : i32
    %c0_i32_0 = arith.constant 0 : i32
    %c0_i32_1 = arith.constant 0 : i32
    return %c0_i32, %c0_i32_0 : i32, i32
  }
  func.func @transform_6(%arg0: i32) -> (i32, i32) {
    %c0_i32 = arith.constant 0 : i32
    %c0_i32_0 = arith.constant 0 : i32
    %c0_i32_1 = arith.constant 0 : i32
    return %c0_i32, %c0_i32_0 : i32, i32
  }
  func.func @transform_7(%arg0: i32) -> (i32, i32) {
    %c0_i32 = arith.constant 0 : i32
    %c0_i32_0 = arith.constant 0 : i32
    %c0_i32_1 = arith.constant 0 : i32
    return %c0_i32, %c0_i32_0 : i32, i32
  }
  func.func @transform_8(%arg0: i32) -> (i32, i32) {
    %c0_i32 = arith.constant 0 : i32
    %c0_i32_0 = arith.constant 0 : i32
    %c0_i32_1 = arith.constant 0 : i32
    return %c0_i32, %c0_i32_0 : i32, i32
  }
  func.func @transform_9(%arg0: i32) -> (i32, i32) {
    %c0_i32 = arith.constant 0 : i32
    %c0_i32_0 = arith.constant 0 : i32
    return %c0_i32, %arg0 : i32, i32
  }
}

</mosaic_0001>

<bundles_post_ra>
// kernel: attention_layer.1
= control target key start
LH: loop header
LB: loop body
LE: loop exit
PB: predicated region body
PF: predicated region fallthrough
CT: control target
= control target key end

     0   :  { %s732_s4 = inlined_call_operand.vmem [shape: f32[128,128], index: 4, kind: input, shape index: {}]   ;;  %s733_s2 = inlined_call_operand.vmem [shape: f32[2,128,128], index: 2, kind: input, shape index: {}]   ;;  %s734_s5 = inlined_call_operand.vmem [shape: f32[1,128], index: 5, kind: input, shape index: {}]   ;;  %s735_s0 = inlined_call_operand.vmem [shape: f32[16,128], index: 0, kind: input, shape index: {}]   ;;  %s736_s1 = inlined_call_operand.vmem [shape: f32[16,128], index: 1, kind: input, shape index: {}]   ;;  %s737_s3 = inlined_call_operand.vmem [shape: f32[2,128,128], index: 3, kind: input, shape index: {}]   ;;  %s738_s6 = inlined_call_operand.vmem [shape: f32[128,128], index: 6, kind: input, shape index: {}]   ;;  %s739_s9 = inlined_call_operand.vmem [shape: f32[16,128], index: 9, kind: output, shape index: {1}]   ;;  %s740_s7 = inlined_call_operand.vmem [shape: f32[1,128], index: 7, kind: input, shape index: {}]   ;;  %s741_s8 = inlined_call_operand.vmem [shape: f32[16,128], index: 8, kind: output, shape index: {0}]  }
   0x1   :  { %v52_v0 = vld [vmem:[%s732_s4 + $0x78] sm:$0xff]  ;;  %v51_v1 = vld [vmem:[%s732_s4 + $0x70] sm:$0xff]  ;;  %v50_v2 = vld [vmem:[%s732_s4 + $0x68] sm:$0xff] }
   0x2   :  { %57 = vmatpush.msra.mxu0 %v52_v0  ;;  %v49_v3 = vld [vmem:[%s732_s4 + $0x60] sm:$0xff]  ;;  %v48_v4 = vld [vmem:[%s732_s4 + $0x58] sm:$0xff]  ;;  %v47_v5 = vld [vmem:[%s732_s4 + $0x50] sm:$0xff] }
   0x3   :  { %v107_v6 = vld [vmem:[%s733_s2 + $0x78] sm:$0xff]  ;;  %v106_v7 = vld [vmem:[%s733_s2 + $0x70] sm:$0xff]  ;;  %v46_v8 = vld [vmem:[%s732_s4 + $0x48] sm:$0xff] }
   0x4   :  { %58 = vmatpush.msra.mxu0 %v51_v1  ;;  %124 = vmatpush.msra.mxu2 %v107_v6  ;;  %v105_v9 = vld [vmem:[%s733_s2 + $0x68] sm:$0xff]  ;;  %v45_v10 = vld [vmem:[%s732_s4 + $0x40] sm:$0xff]  ;;  %v44_v12 = vld [vmem:[%s732_s4 + $0x38] sm:$0xff] }
   0x5   :  { %v104_v11 = vld [vmem:[%s733_s2 + $0x60] sm:$0xff]  ;;  %v103_v13 = vld [vmem:[%s733_s2 + $0x58] sm:$0xff]  ;;  %v43_v14 = vld [vmem:[%s732_s4 + $0x30] sm:$0xff] }
   0x6   :  { %59 = vmatpush.msra.mxu0 %v50_v2  ;;  %125 = vmatpush.msra.mxu2 %v106_v7  ;;  %v102_v15 = vld [vmem:[%s733_s2 + $0x50] sm:$0xff]  ;;  %v42_v16 = vld [vmem:[%s732_s4 + $0x28] sm:$0xff]  ;;  %v41_v18 = vld [vmem:[%s732_s4 + $0x20] sm:$0xff] }
   0x7   :  { %v101_v17 = vld [vmem:[%s733_s2 + $0x48] sm:$0xff]  ;;  %v100_v19 = vld [vmem:[%s733_s2 + $0x40] sm:$0xff]  ;;  %v40_v20 = vld [vmem:[%s732_s4 + $0x18] sm:$0xff] }
   0x8   :  { %60 = vmatpush.msra.mxu0 %v49_v3  ;;  %126 = vmatpush.msra.mxu2 %v105_v9  ;;  %v99_v21 = vld [vmem:[%s733_s2 + $0x38] sm:$0xff]  ;;  %v39_v22 = vld [vmem:[%s732_s4 + $0x10] sm:$0xff]  ;;  %v38_v24 = vld [vmem:[%s732_s4 + $0x8] sm:$0xff] }
   0x9   :  { %v98_v23 = vld [vmem:[%s733_s2 + $0x30] sm:$0xff]  ;;  %v97_v25 = vld [vmem:[%s733_s2 + $0x28] sm:$0xff]  ;;  %v37_v26 = vld [vmem:[%s732_s4] sm:$0xff] }
   0xa   :  { %61 = vmatpush.msra.mxu0 %v48_v4  ;;  %127 = vmatpush.msra.mxu2 %v104_v11  ;;  %v96_v27 = vld [vmem:[%s733_s2 + $0x20] sm:$0xff]  ;;  %v95_v29 = vld [vmem:[%s733_s2 + $0x18] sm:$0xff]  ;;  %v94_v30 = vld [vmem:[%s733_s2 + $0x10] sm:$0xff] }
   0xb   :  { %v493_v28 = vld [vmem:[%s735_s0] sm:$0xff]  ;;  %v93_v31 = vld [vmem:[%s733_s2 + $0x8] sm:$0xff]  ;;  %v123_v34 = vld [vmem:[%s733_s2 + $0xf8] sm:$0xff] }
   0xc   :  { %62 = vmatpush.msra.mxu0 %v47_v5  ;;  %128 = vmatpush.msra.mxu2 %v103_v13  ;;  %v92_v32 = vld [vmem:[%s733_s2] sm:$0xff]  ;;  %v511_v33 = vld [vmem:[%s735_s0 + $0x8] sm:$0xff]  ;;  %v122_v35 = vld [vmem:[%s733_s2 + $0xf0] sm:$0xff] }
   0xd   :  { %v121_v36 = vld [vmem:[%s733_s2 + $0xe8] sm:$0xff]  ;;  %v120_v37 = vld [vmem:[%s733_s2 + $0xe0] sm:$0xff]  ;;  %v119_v38 = vld [vmem:[%s733_s2 + $0xd8] sm:$0xff] }
   0xe   :  { %63 = vmatpush.msra.mxu0 %v46_v8  ;;  %129 = vmatpush.msra.mxu2 %v102_v15  ;;  %v118_v39 = vld [vmem:[%s733_s2 + $0xd0] sm:$0xff]  ;;  %v117_v40 = vld [vmem:[%s733_s2 + $0xc8] sm:$0xff]  ;;  %v116_v41 = vld [vmem:[%s733_s2 + $0xc0] sm:$0xff] }
   0xf   :  { %v115_v42 = vld [vmem:[%s733_s2 + $0xb8] sm:$0xff]  ;;  %v114_v43 = vld [vmem:[%s733_s2 + $0xb0] sm:$0xff]  ;;  %v113_v44 = vld [vmem:[%s733_s2 + $0xa8] sm:$0xff] }
  0x10   :  { %64 = vmatpush.msra.mxu0 %v45_v10  ;;  %130 = vmatpush.msra.mxu2 %v101_v17  ;;  %v112_v45 = vld [vmem:[%s733_s2 + $0xa0] sm:$0xff]  ;;  %v111_v46 = vld [vmem:[%s733_s2 + $0x98] sm:$0xff]  ;;  %v110_v47 = vld [vmem:[%s733_s2 + $0x90] sm:$0xff] }
  0x11   :  { %v109_v48 = vld [vmem:[%s733_s2 + $0x88] sm:$0xff]  ;;  %v108_v49 = vld [vmem:[%s733_s2 + $0x80] sm:$0xff]  ;;  %v217_v62 = vld [vmem:[%s737_s3 + $0x78] sm:$0xff] }
  0x12   :  { %65 = vmatpush.msra.mxu0 %v44_v12  ;;  %131 = vmatpush.msra.mxu2 %v100_v19  ;;  %v348_v50 = vld [vmem:[%s734_s5] ss:$0 sm:$0xff]  ;;  %v81_v57 = vld [vmem:[%s736_s1 + $0x8] sm:$0xff]  ;;  %v233_v63 = vld [vmem:[%s737_s3 + $0xf8] sm:$0xff] }
  0x13   :  { %v80_v52 = vld [vmem:[%s736_s1] sm:$0xff]  ;;  %234 = vmatpush.msra.mxu3 %v217_v62  ;;  %v216_v0 = vld [vmem:[%s737_s3 + $0x70] sm:$0xff]  ;;  %v215_v3 = vld [vmem:[%s737_s3 + $0x68] sm:$0xff] }
  0x14   :  { %66 = vmatpush.msra.mxu0 %v43_v14  ;;  %132 = vmatpush.msra.mxu2 %v99_v21  ;;  %v232_v1 = vld [vmem:[%s737_s3 + $0xf0] sm:$0xff]  ;;  %v231_v4 = vld [vmem:[%s737_s3 + $0xe8] sm:$0xff]  ;;  %v214_v6 = vld [vmem:[%s737_s3 + $0x60] sm:$0xff] }
  0x15   :  { %235 = vmatpush.msra.mxu3 %v216_v0  ;;  %v230_v7 = vld [vmem:[%s737_s3 + $0xe0] sm:$0xff]  ;;  %v213_v9 = vld [vmem:[%s737_s3 + $0x58] sm:$0xff]  ;;  %v212_v12 = vld [vmem:[%s737_s3 + $0x50] sm:$0xff] }
  0x16   :  { %67 = vmatpush.msra.mxu0 %v42_v16  ;;  %133 = vmatpush.msra.mxu2 %v98_v23  ;;  %v229_v10 = vld [vmem:[%s737_s3 + $0xd8] sm:$0xff]  ;;  %v228_v13 = vld [vmem:[%s737_s3 + $0xd0] sm:$0xff]  ;;  %v211_v15 = vld [vmem:[%s737_s3 + $0x48] sm:$0xff] }
  0x17   :  { %236 = vmatpush.msra.mxu3 %v215_v3  ;;  %v227_v16 = vld [vmem:[%s737_s3 + $0xc8] sm:$0xff]  ;;  %v226_v19 = vld [vmem:[%s737_s3 + $0xc0] sm:$0xff]  ;;  %v225_v21 = vld [vmem:[%s737_s3 + $0xb8] sm:$0xff] }
  0x18   :  { %68 = vmatpush.msra.mxu0 %v41_v18  ;;  %134 = vmatpush.msra.mxu2 %v97_v25  ;;  %v210_v18 = vld [vmem:[%s737_s3 + $0x40] sm:$0xff]  ;;  %v208_v23 = vld [vmem:[%s737_s3 + $0x30] sm:$0xff]  ;;  %v290_v0 = vld [vmem:[%s738_s6 + $0x28] sm:$0xff] }
  0x19   :  { %237 = vmatpush.msra.mxu3 %v214_v6  ;;  %v291_v62 = vld [vmem:[%s738_s6 + $0x30] sm:$0xff] }
  0x1a   :  { %69 = vmatpush.msra.mxu0 %v40_v20  ;;  %135 = vmatpush.msra.mxu2 %v96_v27  ;;  %v209_v20 = vld [vmem:[%s737_s3 + $0x38] sm:$0xff]  ;;  %v223_v27 = vld [vmem:[%s737_s3 + $0xa8] sm:$0xff] }
  0x1b   :  { %238 = vmatpush.msra.mxu3 %v213_v9 }
  0x1c   :  { %70 = vmatpush.msra.mxu0 %v39_v22  ;;  %136 = vmatpush.msra.mxu2 %v95_v29 }
  0x1d   :  { %239 = vmatpush.msra.mxu3 %v212_v12 }
  0x1e   :  { %71 = vmatpush.msra.mxu0 %v38_v24  ;;  %137 = vmatpush.msra.mxu2 %v94_v30  ;;  %v224_v24 = vld [vmem:[%s737_s3 + $0xb0] sm:$0xff] }
  0x1f   :  { %240 = vmatpush.msra.mxu3 %v211_v15  ;;  %v286_v15 = vld [vmem:[%s738_s6 + $0x8] sm:$0xff] }
  0x20   :  { %72 = vmatpush.msra.mxu0 %v37_v26  ;;  %138 = vmatpush.msra.mxu2 %v93_v31  ;;  %v207_v26 = vld [vmem:[%s737_s3 + $0x28] sm:$0xff]  ;;  %v206_v31 = vld [vmem:[%s737_s3 + $0x20] sm:$0xff] }
  0x21   :  { %73 = vmatmul.f32.vlgmr.msra.gmra.mxu0 %v493_v28  ;;  %241 = vmatpush.msra.mxu3 %v210_v18 }
  0x22   :  { %139 = vmatpush.msra.mxu2 %v92_v32  ;;  %254 = vmatpush.msrb.mxu0 %v233_v63  ;;  %v222_v32 = vld [vmem:[%s737_s3 + $0xa0] sm:$0xff] }
  0x23   :  { %242 = vmatpush.msra.mxu3 %v209_v20 }
  0x24   :  { %144 = vmatpush.msrb.mxu2 %v123_v34  ;;  %255 = vmatpush.msrb.mxu0 %v232_v1 }
  0x25   :  { %243 = vmatpush.msra.mxu3 %v208_v23 }
  0x26   :  { %145 = vmatpush.msrb.mxu2 %v122_v35  ;;  %256 = vmatpush.msrb.mxu0 %v231_v4 }
  0x27   :  { %244 = vmatpush.msra.mxu3 %v207_v26 }
  0x28   :  { %146 = vmatpush.msrb.mxu2 %v121_v36  ;;  %257 = vmatpush.msrb.mxu0 %v230_v7  ;;  %v205_v36 = vld [vmem:[%s737_s3 + $0x18] sm:$0xff] }
  0x29   :  { %76 = vmatmul.f32.gmra.mxu0 %v511_v33  ;;  %245 = vmatpush.msra.mxu3 %v206_v31 }
  0x2a   :  { %147 = vmatpush.msrb.mxu2 %v120_v37  ;;  %258 = vmatpush.msrb.mxu0 %v229_v10  ;;  %v221_v37 = vld [vmem:[%s737_s3 + $0x98] sm:$0xff] }
  0x2b   :  { %246 = vmatpush.msra.mxu3 %v205_v36 }
  0x2c   :  { %148 = vmatpush.msrb.mxu2 %v119_v38  ;;  %259 = vmatpush.msrb.mxu0 %v228_v13  ;;  %v204_v38 = vld [vmem:[%s737_s3 + $0x10] sm:$0xff]  ;;  %v288_v13 = vld [vmem:[%s738_s6 + $0x18] sm:$0xff] }
  0x2d   :  { %247 = vmatpush.msra.mxu3 %v204_v38 }
  0x2e   :  { %149 = vmatpush.msrb.mxu2 %v118_v39  ;;  %260 = vmatpush.msrb.mxu0 %v227_v16  ;;  %v220_v39 = vld [vmem:[%s737_s3 + $0x90] sm:$0xff]  ;;  %v285_v16 = vld [vmem:[%s738_s6] sm:$0xff] }
  0x30   :  { %150 = vmatpush.msrb.mxu2 %v117_v40  ;;  %261 = vmatpush.msrb.mxu0 %v226_v19  ;;  %v203_v40 = vld [vmem:[%s737_s3 + $0x8] sm:$0xff]  ;;  %v328_v19 = vmul.f32 0.70710677, %v493_v28 }
  0x31   :  { %248 = vmatpush.msra.mxu3 %v203_v40 }
  0x32   :  { %151 = vmatpush.msrb.mxu2 %v116_v41  ;;  %262 = vmatpush.msrb.mxu0 %v225_v21  ;;  %v219_v41 = vld [vmem:[%s737_s3 + $0x88] sm:$0xff] }
  0x34   :  { %152 = vmatpush.msrb.mxu2 %v115_v42  ;;  %263 = vmatpush.msrb.mxu0 %v224_v24  ;;  %v202_v42 = vld [vmem:[%s737_s3] sm:$0xff] }
  0x35   :  { %249 = vmatpush.msra.mxu3 %v202_v42 }
  0x36   :  { %153 = vmatpush.msrb.mxu2 %v114_v43  ;;  %264 = vmatpush.msrb.mxu0 %v223_v27  ;;  %v218_v43 = vld [vmem:[%s737_s3 + $0x80] sm:$0xff] }
  0x38   :  { %154 = vmatpush.msrb.mxu2 %v113_v44  ;;  %265 = vmatpush.msrb.mxu0 %v222_v32 }
  0x3a   :  { %155 = vmatpush.msrb.mxu2 %v112_v45  ;;  %266 = vmatpush.msrb.mxu0 %v221_v37 }
  0x3c   :  { %156 = vmatpush.msrb.mxu2 %v111_v46  ;;  %267 = vmatpush.msrb.mxu0 %v220_v39 }
  0x3e   :  { %157 = vmatpush.msrb.mxu2 %v110_v47  ;;  %268 = vmatpush.msrb.mxu0 %v219_v41 }
  0x40   :  { %158 = vmatpush.msrb.mxu2 %v109_v48  ;;  %269 = vmatpush.msrb.mxu0 %v218_v43  ;;  %v300_v48 = vld [vmem:[%s738_s6 + $0x78] sm:$0xff] }
  0x41   :  { %301 = vmatpush.msra.mxu1 %v300_v48 }
  0x42   :  { %159 = vmatpush.msrb.mxu2 %v108_v49  ;;  %v299_v49 = vld [vmem:[%s738_s6 + $0x70] sm:$0xff] }
  0x43   :  { %302 = vmatpush.msra.mxu1 %v299_v49 }
  0x9e   :  { %v74_v51 = vpop.f32.mrf.mxu0 }
  0x9f   :  { %v75_v53 = vadd.f32 %v348_v50, %v74_v51  ;;  %v298_v51 = vld [vmem:[%s738_s6 + $0x68] sm:$0xff] }
  0xa0   :  { %303 = vmatpush.msra.mxu1 %v298_v51 }
  0xa1   :  { %v82_v54 = vadd.f32 %v80_v52, %v75_v53  ;;  %v297_v53 = vld [vmem:[%s738_s6 + $0x60] sm:$0xff] }
  0xa2   :  { %304 = vmatpush.msra.mxu1 %v297_v53 }
  0xa3   :  { %v84_v55 = vmul.f32 0.70710677, %v82_v54 }
  0xa5   :  { %140 = vmatmul.f32.vlgmr.msra.gmra.mxu2 %v84_v55  ;;  %v296_v55 = vld [vmem:[%s738_s6 + $0x58] sm:$0xff] }
  0xa6   :  { %v77_v56 = vpop.f32.mrf.mxu0  ;;  %305 = vmatpush.msra.mxu1 %v296_v55 }
  0xa7   :  { %v78_v58 = vadd.f32 %v348_v50, %v77_v56 }
  0xa9   :  { %v83_v59 = vadd.f32 %v81_v57, %v78_v58  ;;  %v295_v57 = vld [vmem:[%s738_s6 + $0x50] sm:$0xff] }
  0xaa   :  { %306 = vmatpush.msra.mxu1 %v295_v57 }
  0xab   :  { %v85_v60 = vmul.f32 0.70710677, %v83_v59  ;;  %v294_v59 = vld [vmem:[%s738_s6 + $0x48] sm:$0xff] }
  0xac   :  { %307 = vmatpush.msra.mxu1 %v294_v59 }
  0xad   :  { %160 = vmatmul.f32.vlgmr.msrb.gmra.mxu2 %v85_v60  ;;  %v293_v60 = vld [vmem:[%s738_s6 + $0x40] sm:$0xff] }
  0xae   :  { %308 = vmatpush.msra.mxu1 %v293_v60 }
 0x128   :  { %v141_v61 = vpop.f32.mrf.mxu2 }
 0x130   :  { %v161_v2 = vpop.f32.mrf.mxu2 }
 0x131   :  { %v164_v5 = vmax.f32 %v141_v61, %v161_v2 }
 0x133   :  { %v165_v8 = vrot.slane %v164_v5, 4 }
 0x135   :  { %v166_v11 = vmax.f32 %v164_v5, %v165_v8 }
 0x137   :  { %v167_v14 = vrot.slane %v166_v11, 2 }
 0x139   :  { %v168_v17 = vmax.f32 %v166_v11, %v167_v14  ;;  %v287_v14 = vld [vmem:[%s738_s6 + $0x10] sm:$0xff] }
 0x13b   :  { %v169_v22 = vrot.slane %v168_v17, 1 }
 0x13d   :  { %v170_v25 = vmax.f32 %v168_v17, %v169_v22  ;;  %v349_v22 = vld [vmem:[%s740_s7] ss:$0 sm:$0xff] }
 0x13f   :  { %v171_v29 = vsub.f32 %v141_v61, %v170_v25  ;;  %v172_v30 = vsub.f32 %v161_v2, %v170_v25  ;;  %v292_v61 = vld [vmem:[%s738_s6 + $0x38] sm:$0xff]  ;;  %v289_v2 = vld [vmem:[%s738_s6 + $0x20] sm:$0xff]  ;;  %v329_v25 = vmul.f32 0.70710677, %v511_v33 }
 0x140   :  { %309 = vmatpush.msra.mxu1 %v292_v61 }
 0x141   :  { %v173_v34 = vmul.f32 1.442695, %v171_v29  ;;  %v175_v35 = vmul.f32 1.442695, %v172_v30 }
 0x142   :  { %310 = vmatpush.msra.mxu1 %v291_v62 }
 0x143   :  { %350 = vpow2.f32 %v173_v34 }
 0x144   :  { %352 = vpow2.f32 %v175_v35  ;;  %311 = vmatpush.msra.mxu1 %v290_v0 }
 0x146   :  { %312 = vmatpush.msra.mxu1 %v289_v2 }
 0x148   :  { %313 = vmatpush.msra.mxu1 %v288_v13 }
 0x149   :  { %v351_v44 = vpop.eup %350 }
 0x14a   :  { %v353_v45 = vpop.eup %352  ;;  %314 = vmatpush.msra.mxu1 %v287_v14 }
 0x14b   :  { %v177_v46 = vadd.f32 %v353_v45, %v351_v44 }
 0x14c   :  { %315 = vmatpush.msra.mxu1 %v286_v15 }
 0x14d   :  { %v178_v47 = vrot.slane %v177_v46, 4 }
 0x14e   :  { %316 = vmatpush.msra.mxu1 %v285_v16 }
 0x14f   :  { %v179_v50 = vadd.f32 %v178_v47, %v177_v46 }
 0x151   :  { %v180_v52 = vrot.slane %v179_v50, 2 }
 0x153   :  { %v181_v54 = vadd.f32 %v180_v52, %v179_v50 }
 0x155   :  { %v182_v56 = vrot.slane %v181_v54, 1 }
 0x157   :  { %v183_v58 = vadd.f32 %v182_v56, %v181_v54 }
 0x159   :  { %354 = vrcp.f32 %v183_v58  ;;  %v195_v4 = vand.u32 2147483648, %v183_v58  ;;  %v193_v6 = vand.u32 2147483647, %v183_v58  ;;  %vm189_vm1 = vweird.f32 %v183_v58 }
 0x15b   :  { %v196_v8 = vor.u32 1.1754944e-38, %v195_v4  ;;  %vm194_vm3 = vcmp.eq.f32.partialorder %v193_v6, 8.507059e+37 }
 0x15f   :  { %v355_v63 = vpop.eup %354 }
 0x160   :  { %v185_v1 = vmul.f32 %v355_v63, %v183_v58  ;;  %vm190_vm0 = vweird.f32 %v355_v63 }
 0x161   :  { %vm191_vm2 = vmor %vm189_vm1, %vm190_vm0 }
 0x162   :  { %v186_v3 = vsub.f32 1.0, %v185_v1 }
 0x164   :  { %v187_v5 = vmul.f32 %v355_v63, %v186_v3 }
 0x166   :  { %v188_v7 = vadd.f32 %v355_v63, %v187_v5 }
 0x168   :  { %v192_v9 = vsel %vm191_vm2, %v355_v63, %v188_v7 }
 0x169   :  { %v197_v10 = vsel %vm194_vm3, %v196_v8, %v192_v9 }
 0x16a   :  { %v198_v11 = vmul.f32 %v351_v44, %v197_v10  ;;  %v199_v12 = vmul.f32 %v353_v45, %v197_v10 }
 0x16c   :  { %200 = vst [vmem:[%s739_s9] sm:$0xff] %v198_v11  ;;  %250 = vmatmul.f32.vlgmr.msra.gmra.mxu3 %v198_v11  ;;  %270 = vmatmul.f32.vlgmr.msrb.gmra.mxu0 %v199_v12 }
 0x16d   :  { %201 = vst [vmem:[%s739_s9 + $0x8] sm:$0xff] %v199_v12 }
 0x1e9   :  { %v271_v18 = vpop.f32.mrf.mxu0 }
 0x1ef   :  { %v251_v17 = vpop.f32.mrf.mxu3 }
 0x1f0   :  { %317 = vmatmul.f32.vlgmr.msra.gmra.mxu1 %v251_v17 }
 0x1f8   :  { %320 = vmatmul.f32.gmra.mxu1 %v271_v18 }
 0x26d   :  { %v318_v20 = vpop.f32.mrf.mxu1 }
 0x26e   :  { %v324_v21 = vmul.f32 2.828427, %v318_v20 }
 0x270   :  { %v330_v23 = vadd.f32 %v328_v19, %v324_v21 }
 0x272   :  { %v336_v24 = vadd.f32 %v349_v22, %v330_v23 }
 0x274   :  { %338 = vst [vmem:[%s741_s8] sm:$0xff] %v336_v24 }
 0x275   :  { %v321_v26 = vpop.f32.mrf.mxu1 }
 0x276   :  { %v325_v27 = vmul.f32 2.828427, %v321_v26 }
 0x278   :  { %v331_v29 = vadd.f32 %v329_v25, %v325_v27 }
 0x27a   :  { %v337_v30 = vadd.f32 %v349_v22, %v331_v29 }
 0x27c   :  { %339 = vst [vmem:[%s741_s8 + $0x8] sm:$0xff] %v337_v30 }

</bundles_post_ra>
